<compile_context>
chip_gen: v7x
topology: tpu7x:2x2x1
jax: 0.10.0
libtpu: 0.0.40
codegen_flags: <defaults>
</compile_context>

<pallas_src>
import math

import jax
import jax.numpy as jnp
from jax.experimental import pallas as pl
from jax.experimental.pallas import tpu as pltpu


def _round_up(x, m):
    return (x + m - 1) // m * m


# ------------------------------- kernel -------------------------------------

def _ffn_kernel(x_ref, w1_ref, b1_ref, w2_ref, b2_ref, o_ref, acc_ref):
    # x_ref:  (tm, ep)    bf16      w1_ref: (ep, tmid)  bf16   b1_ref: (1, tmid) f32
    # w2_ref: (tmid, ep)  bf16      b2_ref: (1, ep)     f32
    # o_ref:  (tm, ep)    bf16      acc_ref:(tm, ep)    f32 VMEM scratch
    k = pl.program_id(1)

    @pl.when(k == 0)
    def _():
        acc_ref[...] = jnp.zeros_like(acc_ref)

    h = jnp.dot(x_ref[...], w1_ref[...],
                preferred_element_type=jnp.float32) + b1_ref[...]
    # tanh-approximate GELU (lowers to the otherwise-idle EUP tanh slot).
    h = jax.nn.gelu(h, approximate=True)

    acc_ref[...] += jnp.dot(h.astype(jnp.bfloat16), w2_ref[...],
                            preferred_element_type=jnp.float32)

    @pl.when(k == pl.num_programs(1) - 1)
    def _():
        # Dropout(p=0.01) is identity in eval mode.
        # TODO(synk): training-mode dropout would need pltpu.prng_seed +
        # pltpu.prng_random_bits masking here.
        o_ref[...] = (acc_ref[...] + b2_ref[...]).astype(o_ref.dtype)


# ------------------------------- wrapper -------------------------------------

def feed_forward(x, params, *, block_m=256):
    """Fused y = linear_2(gelu(linear_1(x))); x has shape (..., embed_dim).

    Returns bf16 (downstream consumers take bf16; halves output HBM traffic).
    """
    e = params["embed_dim"]
    ep, midp, tmid = params["ep"], params["midp"], params["tmid"]
    w1p, b1p, w2p, b2p = params["w1p"], params["b1p"], params["w2p"], params["b2p"]

    orig_shape = x.shape
    assert orig_shape[-1] == e
    x2 = x.reshape(-1, e)
    m = x2.shape[0]

    # Row tile: multiple of 16 (native bf16 tile is (16,128)); prefer >=2 grid
    # steps along M so dimension_semantics=("parallel", ...) can shard the two
    # v7x TensorCores. (At m<=16 rows there is only one packed tile available.)
    m16 = _round_up(m, 16)
    if m16 <= 16:
        tm = m16
    elif m16 <= 2 * block_m:
        tm = _round_up((m16 + 1) // 2, 16)
    else:
        tm = block_m
    mp = _round_up(m16, tm)

    # Hot path: cast once; pad only when the shapes actually need it.
    if x2.dtype != jnp.bfloat16:
        x2 = x2.astype(jnp.bfloat16)
    needs_pad = (mp != m) or (ep != e)
    if needs_pad:
        x2 = jnp.pad(x2, ((0, mp - m), (0, ep - e)))

    grid = (mp // tm, midp // tmid)

    # Explicit VMEM budget: double-buffered streamed blocks + f32 accumulator,
    # with headroom; capped so it also fits v7x's 64-MiB physical VMEM.
    bf, f32 = 2, 4
    vmem_needed = (2 * tm * ep * bf            # x tile (double-buffered)
                   + 2 * ep * tmid * bf        # w1 slab
                   + 2 * tmid * f32            # b1 slab
                   + 2 * tmid * ep * bf        # w2 slab
                   + 2 * ep * f32              # b2
                   + 2 * tm * ep * bf          # out tile
                   + tm * ep * f32)            # accumulator scratch
    vmem_limit = min(56 * 1024 * 1024, max(2 * vmem_needed, 32 * 1024 * 1024))

    out = pl.pallas_call(
        _ffn_kernel,
        grid=grid,
        in_specs=[
            pl.BlockSpec((tm, ep),   lambda i, k: (i, 0)),   # x tile (reused over k)
            pl.BlockSpec((ep, tmid), lambda i, k: (0, k)),   # w1 slab
            pl.BlockSpec((1, tmid),  lambda i, k: (0, k)),   # b1 slab
            pl.BlockSpec((tmid, ep), lambda i, k: (k, 0)),   # w2 slab
            pl.BlockSpec((1, ep),    lambda i, k: (0, 0)),   # b2 (resident)
        ],
        out_specs=pl.BlockSpec((tm, ep), lambda i, k: (i, 0)),
        out_shape=jax.ShapeDtypeStruct((mp, ep), jnp.bfloat16),
        scratch_shapes=[pltpu.VMEM((tm, ep), jnp.float32)],
        compiler_params=pltpu.CompilerParams(
            dimension_semantics=("parallel", "arbitrary"),
            vmem_limit_bytes=vmem_limit),
    )(x2, w1p, b1p, w2p, b2p)

    if needs_pad:
        out = out[:m, :e]
    return out.reshape(orig_shape)


# -------------------------- parameter construction ---------------------------

def init_feed_forward(key, embed_dim, middle_dim, *, block_mid=512,
                      feature_granule=128):
    """PyTorch nn.Linear default init. Weights are padded and cast to bf16 ONCE
    here (canonical params), so the forward pass does no per-call pad/cast.

    feature_granule: 128 = lane width (right for v5e / already-aligned dims);
    use 256 on v6e/v7x when embed/middle aren't 256-aligned to fill the
    256x256 MXU. block_mid: mid (reduction) tile for linear_2 — pick smaller on
    v7x (64 MiB VMEM), larger on v5e/v6e.
    """
    k1, k2, k3, k4 = jax.random.split(key, 4)
    bound1 = 1.0 / math.sqrt(embed_dim)
    bound2 = 1.0 / math.sqrt(middle_dim)
    w1 = jax.random.uniform(k1, (embed_dim, middle_dim), jnp.float32, -bound1, bound1)
    b1 = jax.random.uniform(k2, (middle_dim,), jnp.float32, -bound1, bound1)
    w2 = jax.random.uniform(k3, (middle_dim, embed_dim), jnp.float32, -bound2, bound2)
    b2 = jax.random.uniform(k4, (embed_dim,), jnp.float32, -bound2, bound2)

    ep = _round_up(embed_dim, feature_granule)
    midp = _round_up(middle_dim, feature_granule)
    tmid = min(block_mid, midp)          # mid tile for the reduction grid axis
    midp = _round_up(midp, tmid)         # make the mid grid exact

    # Zero padding is exact: gelu(0 + 0) = 0 and the padded w2 rows/b2 cols are 0.
    w1p = jnp.pad(w1.astype(jnp.bfloat16),
                  ((0, ep - embed_dim), (0, midp - middle_dim)))
    b1p = jnp.pad(b1.reshape(1, -1), ((0, 0), (0, midp - middle_dim)))
    w2p = jnp.pad(w2.astype(jnp.bfloat16),
                  ((0, midp - middle_dim), (0, ep - embed_dim)))
    b2p = jnp.pad(b2.reshape(1, -1), ((0, 0), (0, ep - embed_dim)))

    return {
        "embed_dim": embed_dim, "middle_dim": middle_dim,
        "ep": ep, "midp": midp, "tmid": tmid,
        "w1p": w1p, "b1p": b1p, "w2p": w2p, "b2p": b2p,
        # unpadded f32 copies kept only for the reference check below
        "_w1": w1, "_b1": b1, "_w2": w2, "_b2": b2,
    }


def feed_forward_ref(x, params):
    """Pure-JAX f32 reference (same tanh-GELU approximation)."""
    h = x.astype(jnp.float32) @ params["_w1"] + params["_b1"]
    h = jax.nn.gelu(h, approximate=True)
    return h @ params["_w2"] + params["_b2"]


# ---------------------------------- main -------------------------------------

if __name__ == "__main__":
    batch, seq = 2, 8
    embed_dim, middle_dim = 32, 64       # small shapes consistent with the module

    key = jax.random.PRNGKey(0)
    kp, kx = jax.random.split(key)
    params = init_feed_forward(kp, embed_dim, middle_dim)
    x = jax.random.normal(kx, (batch, seq, embed_dim), jnp.float32)

    out = jax.block_until_ready(feed_forward(x, params))

    assert out.shape == (batch, seq, embed_dim)
    assert out.dtype == jnp.bfloat16
    assert bool(jnp.all(jnp.isfinite(out.astype(jnp.float32))))

    # loose tolerance: bf16 matmul inputs, f32 accumulation, bf16 output
    ref = feed_forward_ref(x, params)
    err = float(jnp.max(jnp.abs(out.astype(jnp.float32) - ref)))
    assert err < 5e-2, err

    print("KERNEL_OK")
</pallas_src>

<mosaic_0001>
module attributes {stable_mosaic.version = 11 : i64} {
  func.func @_ffn_kernel(%arg0: i32, %arg1: i32, %arg2: memref<16x128xbf16, #tpu.memory_space<vmem>>, %arg3: memref<128x128xbf16, #tpu.memory_space<vmem>>, %arg4: memref<1x128xf32, #tpu.memory_space<vmem>>, %arg5: memref<128x128xbf16, #tpu.memory_space<vmem>>, %arg6: memref<1x128xf32, #tpu.memory_space<vmem>>, %arg7: memref<16x128xbf16, #tpu.memory_space<vmem>>, %arg8: memref<16x128xf32, #tpu.memory_space<vmem>>) attributes {dimension_semantics = [#tpu.dimension_semantics<parallel>, #tpu.dimension_semantics<arbitrary>], iteration_bounds = array<i64: 1, 1>, scalar_prefetch = 0 : i64, scratch_operands = 1 : i64, tpu.core_type = #tpu.core_type<tc>, window_params = [{transform_indices = @transform_0, window_bounds = array<i64: 16, 128>}, {transform_indices = @transform_1, window_bounds = array<i64: 128, 128>}, {transform_indices = @transform_2, window_bounds = array<i64: 1, 128>}, {transform_indices = @transform_3, window_bounds = array<i64: 128, 128>}, {pipeline_mode = #tpu.pipeline_mode<synchronous>, transform_indices = @transform_4, window_bounds = array<i64: 1, 128>}, {transform_indices = @transform_5, window_bounds = array<i64: 16, 128>}]} {
    %c0_i32 = arith.constant 0 : i32
    %0 = arith.cmpi eq, %arg1, %c0_i32 : i32
    %1 = arith.extui %0 : i1 to i32
    %c0_i32_0 = arith.constant 0 : i32
    %2 = arith.cmpi ne, %1, %c0_i32_0 : i32
    scf.if %2 {
      %cst_19 = arith.constant 0.000000e+00 : f32
      %31 = vector.broadcast %cst_19 : f32 to vector<16x128xf32>
      %c0_20 = arith.constant 0 : index
      %c0_21 = arith.constant 0 : index
      %32 = vector.load %arg8[%c0_20, %c0_21] : memref<16x128xf32, #tpu.memory_space<vmem>>, vector<16x128xf32>
      tpu.vector_store %arg8[%c0_20, %c0_21], %31 {strides = array<i32>} : memref<16x128xf32, #tpu.memory_space<vmem>>, vector<16x128xf32>,
    } else {
    }
    %c0 = arith.constant 0 : index
    %c0_1 = arith.constant 0 : index
    %3 = vector.load %arg2[%c0, %c0_1] : memref<16x128xbf16, #tpu.memory_space<vmem>>, vector<16x128xbf16>
    %c0_2 = arith.constant 0 : index
    %c0_3 = arith.constant 0 : index
    %4 = vector.load %arg3[%c0_2, %c0_3] : memref<128x128xbf16, #tpu.memory_space<vmem>>, vector<128x128xbf16>
    %cst = arith.constant dense<0.000000e+00> : vector<16x128xf32>
    %5 = tpu.matmul %3, %4, %cst {dimension_numbers = #tpu.dot_dimension_numbers<[1], [0], [0], [1], [0, 0, 1, 1], [], []>} : vector<16x128xbf16>, vector<128x128xbf16>, vector<16x128xf32> -> vector<16x128xf32>
    %c0_4 = arith.constant 0 : index
    %c0_5 = arith.constant 0 : index
    %6 = vector.load %arg4[%c0_4, %c0_5] : memref<1x128xf32, #tpu.memory_space<vmem>>, vector<1x128xf32>
    %7 = vector.broadcast %6 : vector<1x128xf32> to vector<16x128xf32>
    %8 = arith.addf %5, %7 : vector<16x128xf32>
    %9 = arith.mulf %8, %8 : vector<16x128xf32>
    %10 = arith.mulf %8, %9 : vector<16x128xf32>
    %cst_6 = arith.constant 4.471500e-02 : f32
    %11 = vector.broadcast %cst_6 : f32 to vector<16x128xf32>
    %12 = arith.mulf %11, %10 : vector<16x128xf32>
    %13 = arith.addf %8, %12 : vector<16x128xf32>
    %cst_7 = arith.constant 0.797884583 : f32
    %14 = vector.broadcast %cst_7 : f32 to vector<16x128xf32>
    %15 = arith.mulf %14, %13 : vector<16x128xf32>
    %16 = math.tanh %15 : vector<16x128xf32>
    %cst_8 = arith.constant 1.000000e+00 : f32
    %17 = vector.broadcast %cst_8 : f32 to vector<16x128xf32>
    %18 = arith.addf %17, %16 : vector<16x128xf32>
    %cst_9 = arith.constant 5.000000e-01 : f32
    %19 = vector.broadcast %cst_9 : f32 to vector<16x128xf32>
    %20 = arith.mulf %19, %18 : vector<16x128xf32>
    %21 = arith.mulf %8, %20 : vector<16x128xf32>
    %c0_10 = arith.constant 0 : index
    %c0_11 = arith.constant 0 : index
    %22 = vector.load %arg8[%c0_10, %c0_11] : memref<16x128xf32, #tpu.memory_space<vmem>>, vector<16x128xf32>
    %23 = arith.truncf %21 : vector<16x128xf32> to vector<16x128xbf16>
    %c0_12 = arith.constant 0 : index
    %c0_13 = arith.constant 0 : index
    %24 = vector.load %arg5[%c0_12, %c0_13] : memref<128x128xbf16, #tpu.memory_space<vmem>>, vector<128x128xbf16>
    %cst_14 = arith.constant dense<0.000000e+00> : vector<16x128xf32>
    %25 = tpu.matmul %23, %24, %cst_14 {dimension_numbers = #tpu.dot_dimension_numbers<[1], [0], [0], [1], [0, 0, 1, 1], [], []>} : vector<16x128xbf16>, vector<128x128xbf16>, vector<16x128xf32> -> vector<16x128xf32>
    %26 = arith.addf %22, %25 : vector<16x128xf32>
    %c0_15 = arith.constant 0 : index
    %c0_16 = arith.constant 0 : index
    %27 = vector.load %arg8[%c0_15, %c0_16] : memref<16x128xf32, #tpu.memory_space<vmem>>, vector<16x128xf32>
    tpu.vector_store %arg8[%c0_15, %c0_16], %26 {strides = array<i32>} : memref<16x128xf32, #tpu.memory_space<vmem>>, vector<16x128xf32>,
    %c0_i32_17 = arith.constant 0 : i32
    %28 = arith.cmpi eq, %arg1, %c0_i32_17 : i32
    %29 = arith.extui %28 : i1 to i32
    %c0_i32_18 = arith.constant 0 : i32
    %30 = arith.cmpi ne, %29, %c0_i32_18 : i32
    scf.if %30 {
      %c0_19 = arith.constant 0 : index
      %c0_20 = arith.constant 0 : index
      %31 = vector.load %arg8[%c0_19, %c0_20] : memref<16x128xf32, #tpu.memory_space<vmem>>, vector<16x128xf32>
      %c0_21 = arith.constant 0 : index
      %c0_22 = arith.constant 0 : index
      %32 = vector.load %arg6[%c0_21, %c0_22] : memref<1x128xf32, #tpu.memory_space<vmem>>, vector<1x128xf32>
      %33 = vector.broadcast %32 : vector<1x128xf32> to vector<16x128xf32>
      %34 = arith.addf %31, %33 : vector<16x128xf32>
      %35 = arith.truncf %34 : vector<16x128xf32> to vector<16x128xbf16>
      %c0_23 = arith.constant 0 : index
      %c0_24 = arith.constant 0 : index
      %36 = vector.load %arg7[%c0_23, %c0_24] : memref<16x128xbf16, #tpu.memory_space<vmem>>, vector<16x128xbf16>
      tpu.vector_store %arg7[%c0_23, %c0_24], %35 {strides = array<i32>} : memref<16x128xbf16, #tpu.memory_space<vmem>>, vector<16x128xbf16>,
    } else {
    }
    return
  }
  func.func @transform_0(%arg0: i32, %arg1: i32) -> (i32, i32) {
    %c0_i32 = arith.constant 0 : i32
    %c0_i32_0 = arith.constant 0 : i32
    return %arg0, %c0_i32 : i32, i32
  }
  func.func @transform_1(%arg0: i32, %arg1: i32) -> (i32, i32) {
    %c0_i32 = arith.constant 0 : i32
    %c0_i32_0 = arith.constant 0 : i32
    return %c0_i32, %arg1 : i32, i32
  }
  func.func @transform_2(%arg0: i32, %arg1: i32) -> (i32, i32) {
    %c0_i32 = arith.constant 0 : i32
    %c0_i32_0 = arith.constant 0 : i32
    return %c0_i32, %arg1 : i32, i32
  }
  func.func @transform_3(%arg0: i32, %arg1: i32) -> (i32, i32) {
    %c0_i32 = arith.constant 0 : i32
    %c0_i32_0 = arith.constant 0 : i32
    return %arg1, %c0_i32 : i32, i32
  }
  func.func @transform_4(%arg0: i32, %arg1: i32) -> (i32, i32) {
    %c0_i32 = arith.constant 0 : i32
    %c0_i32_0 = arith.constant 0 : i32
    %c0_i32_1 = arith.constant 0 : i32
    return %c0_i32, %c0_i32_0 : i32, i32
  }
  func.func @transform_5(%arg0: i32, %arg1: i32) -> (i32, i32) {
    %c0_i32 = arith.constant 0 : i32
    %c0_i32_0 = arith.constant 0 : i32
    return %arg0, %c0_i32 : i32, i32
  }
}

</mosaic_0001>

<bundles_post_ra>
// kernel: tpu_custom_call.1
= control target key start
LH: loop header
LB: loop body
LE: loop exit
PB: predicated region body
PF: predicated region fallthrough
CT: control target
= control target key end

     0   :  { %10 = vsyncpa [#allocation4], 0  ;;  %s681_s0 = inlined_call_operand.hbm [shape: bf16[16,128], index: 0, kind: input, shape index: {}]   ;;  %s682_s1 = inlined_call_operand.hbm [shape: bf16[128,128], index: 1, kind: input, shape index: {}]   ;;  %s683_s2 = inlined_call_operand.vmem [shape: f32[1,128], index: 2, kind: input, shape index: {}]   ;;  %s684_s3 = inlined_call_operand.hbm [shape: bf16[128,128], index: 3, kind: input, shape index: {}]   ;;  %s685_s4 = inlined_call_operand.vmem [shape: f32[1,128], index: 4, kind: input, shape index: {}]   ;;  %s686_s5 = inlined_call_operand.hbm [shape: bf16[16,128], index: 5, kind: output, shape index: {}]  }
   0x1   :  { %11 = vsyncpa [#allocation7], 0 }
   0x2   :  { %12 = vsyncpa [#allocation5], 0  ;;  %s570_s18 = smov [#allocation6]   ;;  %s571_s20 = smov [#allocation3]  }
   0x3   :  { %s30_s19 = sshll.u32 %s570_s18, 4  ;;  %s18_s21 = sshll.u32 %s571_s20, 4  ;;  %s31_s19 = int_to_ptr.vmem [resolvable:$true] %s30_s19  ;;  %s608_s21 = int_to_ptr.vmem [resolvable:$true] %s18_s21 }
   0x4   :  { %s476_s24 = scalar_lea.hbm %s682_s1, 1024 }
   0x5   :  { %p477_p0 = scmp.ne.s32.totalorder %s682_s1, %s476_s24  ;;  %p480_p1 = scmp.lt.u32.totalorder %s476_s24, %s682_s1 }
   0x7   :  { %p482_p2 = pnand %p480_p1, %p477_p0 }
   0x9   :  { %485 = shalt.err (!%p482_p2)
}
   0xa   :  { %s486_s29 = scalar_lea.vmem %s31_s19, 1024  ;;  %p491_p4 = scmp.lt.s32.totalorder %s31_s19, %s31_s19 }
   0xb   :  { %p487_p3 = scmp.ne.s32.totalorder %s31_s19, %s486_s29  ;;  %p492_p5 = scmp.lt.s32.totalorder %s486_s29, %s486_s29 }
   0xd   :  { %p493_p6 = por %p492_p5, %p491_p4 }
   0xf   :  { %p494_p7 = pnand %p493_p6, %p487_p3 }
  0x11   :  { %497 = shalt.err (!%p494_p7)
}
  0x12   :  { %s572_s30 = smov 64   ;;  %s573_s6 = smov 4  }
  0x13   :  { %36 = dma.hbm_to_vmem [thread:$0]  %s682_s1, 1024, %s31_s19, [#allocation7], %s572_s30, %s572_s30, %s573_s6  }
  0x14   :  { %s498_s11 = scalar_lea.hbm %s681_s0, 128 }
  0x15   :  { %p499_p8 = scmp.ne.s32.totalorder %s681_s0, %s498_s11  ;;  %p502_p9 = scmp.lt.u32.totalorder %s498_s11, %s681_s0 }
  0x17   :  { %p504_p10 = pnand %p502_p9, %p499_p8 }
  0x19   :  { %507 = shalt.err (!%p504_p10)
}
  0x1a   :  { %s508_s16 = scalar_lea.vmem %s608_s21, 128  ;;  %p513_p12 = scmp.lt.s32.totalorder %s608_s21, %s608_s21 }
  0x1b   :  { %p509_p11 = scmp.ne.s32.totalorder %s608_s21, %s508_s16  ;;  %p514_p13 = scmp.lt.s32.totalorder %s508_s16, %s508_s16 }
  0x1d   :  { %p515_p0 = por %p514_p13, %p513_p12 }
  0x1f   :  { %p516_p1 = pnand %p515_p0, %p509_p11 }
  0x21   :  { %519 = shalt.err (!%p516_p1)
}
  0x22   :  { %24 = dma.hbm_to_vmem [thread:$0]  %s681_s0, 128, %s608_s21, [#allocation4], %s572_s30, %s572_s30, %s573_s6  }
  0x23   :  { %s574_s18 = smov [#allocation8]   ;;  %s520_s23 = scalar_lea.hbm %s684_s3, 1024 }
  0x24   :  { %s44_s19 = sshll.u32 %s574_s18, 4  ;;  %p521_p2 = scmp.ne.s32.totalorder %s684_s3, %s520_s23  ;;  %s45_s19 = int_to_ptr.vmem [resolvable:$true] %s44_s19 }
  0x25   :  { %p524_p3 = scmp.lt.u32.totalorder %s520_s23, %s684_s3 }
  0x27   :  { %p526_p4 = pnand %p524_p3, %p521_p2 }
  0x29   :  { %529 = shalt.err (!%p526_p4)
}
  0x2a   :  { %s530_s28 = scalar_lea.vmem %s45_s19, 1024  ;;  %p535_p6 = scmp.lt.s32.totalorder %s45_s19, %s45_s19 }
  0x2b   :  { %p531_p5 = scmp.ne.s32.totalorder %s45_s19, %s530_s28  ;;  %p536_p7 = scmp.lt.s32.totalorder %s530_s28, %s530_s28 }
  0x2d   :  { %p537_p8 = por %p536_p7, %p535_p6 }
  0x2f   :  { %p538_p9 = pnand %p537_p8, %p531_p5 }
  0x31   :  { %541 = shalt.err (!%p538_p9)
}
  0x32   :  { %50 = dma.hbm_to_vmem [thread:$0]  %s684_s3, 1024, %s45_s19, [#allocation7], %s572_s30, %s572_s30, %s573_s6  }
  0x33   :  { %564 = dma.done.wait [#allocation4], 128  }
  0x34   :  { %565 = vsyncadd [#allocation4], 4294967168 }
  0x35   :  { %566 = dma.done.wait [#allocation7], 2048  }
  0x36   :  { %567 = vsyncadd [#allocation7], 4294965248  ;;  %v575_v0 = vmov 0.0   ;;  %vm576_vm0 = vmmov 0   ;;  %v455_v1 = vld [vmem:[#allocation6] sm:$0xff]   ;;  %v456_v2 = vld [vmem:[#allocation6 + $0x8] sm:$0xff]  }
  0x37   :  { %407 = vmatprep.subr.bf16.mxu0 %v575_v0  ;;  %423 = vmatprep.mubr.msk.bf16.mxu0 %vm576_vm0, %v575_v0  ;;  %v457_v3 = vld [vmem:[#allocation6 + $0x10] sm:$0xff]   ;;  %v458_v4 = vld [vmem:[#allocation6 + $0x18] sm:$0xff]   ;;  %v459_v5 = vld [vmem:[#allocation6 + $0x20] sm:$0xff]   ;;  %s577_s8 = smov [#allocation9]  }
  0x38   :  { %427 = vmatprep.subr.bf16.mxu1 %v575_v0  ;;  %443 = vmatprep.mubr.msk.bf16.mxu1 %vm576_vm0, %v575_v0  ;;  %v460_v6 = vld [vmem:[#allocation6 + $0x28] sm:$0xff]   ;;  %v461_v7 = vld [vmem:[#allocation6 + $0x30] sm:$0xff]   ;;  %v462_v8 = vld [vmem:[#allocation6 + $0x38] sm:$0xff]   ;;  %s348_s9 = sshll.u32 %s577_s8, 4  ;;  %s349_s9 = int_to_ptr.vmem [resolvable:$true] %s348_s9 }
  0x39   :  { %408 = vmatpush3.bf16.msra.mxu0 %v455_v1  ;;  %v463_v9 = vld [vmem:[#allocation3] sm:$0xff]   ;;  %v464_v10 = vld [vmem:[#allocation8] sm:$0xff]   ;;  %v465_v11 = vld [vmem:[#allocation8 + $0x8] sm:$0xff]   ;;  %s542_s10 = scalar_lea.vmem %s349_s9, 128  ;;  %p547_p11 = scmp.lt.s32.totalorder %s349_s9, %s349_s9 }
  0x3a   :  { %409 = vmatprep.subr.bf16.mxu0 %v575_v0  ;;  %428 = vmatpush3.bf16.msra.mxu1 %v464_v10  ;;  %v466_v12 = vld [vmem:[#allocation8 + $0x10] sm:$0xff]   ;;  %v467_v13 = vld [vmem:[#allocation8 + $0x18] sm:$0xff]   ;;  %v468_v14 = vld [vmem:[#allocation8 + $0x20] sm:$0xff]   ;;  %p543_p10 = scmp.ne.s32.totalorder %s349_s9, %s542_s10  ;;  %p548_p12 = scmp.lt.s32.totalorder %s542_s10, %s542_s10 }
  0x3b   :  { %429 = vmatprep.subr.bf16.mxu1 %v575_v0  ;;  %v469_v15 = vld [vmem:[#allocation8 + $0x28] sm:$0xff]   ;;  %v470_v16 = vld [vmem:[#allocation8 + $0x30] sm:$0xff]   ;;  %v471_v17 = vld [vmem:[#allocation8 + $0x38] sm:$0xff]  }
  0x3c   :  { %v361_v18 = vld [vmem:[%s683_s2] ss:$0 sm:$0xff]  ;;  %p549_p13 = por %p548_p12, %p547_p11 }
  0x3d   :  { %410 = vmatpush3.bf16.msra.mxu0 %v456_v2  ;;  %v379_v45 = vld [vmem:[%s685_s4] ss:$0 sm:$0xff] }
  0x3e   :  { %411 = vmatprep.subr.bf16.mxu0 %v575_v0  ;;  %430 = vmatpush3.bf16.msra.mxu1 %v465_v11  ;;  %p550_p0 = pnand %p549_p13, %p543_p10 }
  0x3f   :  { %431 = vmatprep.subr.bf16.mxu1 %v575_v0 }
  0x41   :  { %412 = vmatpush3.bf16.msra.mxu0 %v457_v3 }
  0x42   :  { %413 = vmatprep.subr.bf16.mxu0 %v575_v0  ;;  %432 = vmatpush3.bf16.msra.mxu1 %v466_v12 }
  0x43   :  { %433 = vmatprep.subr.bf16.mxu1 %v575_v0 }
  0x45   :  { %414 = vmatpush3.bf16.msra.mxu0 %v458_v4 }
  0x46   :  { %415 = vmatprep.subr.bf16.mxu0 %v575_v0  ;;  %434 = vmatpush3.bf16.msra.mxu1 %v467_v13 }
  0x47   :  { %435 = vmatprep.subr.bf16.mxu1 %v575_v0 }
  0x49   :  { %416 = vmatpush3.bf16.msra.mxu0 %v459_v5 }
  0x4a   :  { %417 = vmatprep.subr.bf16.mxu0 %v575_v0  ;;  %436 = vmatpush3.bf16.msra.mxu1 %v468_v14 }
  0x4b   :  { %437 = vmatprep.subr.bf16.mxu1 %v575_v0 }
  0x4d   :  { %418 = vmatpush3.bf16.msra.mxu0 %v460_v6 }
  0x4e   :  { %419 = vmatprep.subr.bf16.mxu0 %v575_v0  ;;  %438 = vmatpush3.bf16.msra.mxu1 %v469_v15 }
  0x4f   :  { %439 = vmatprep.subr.bf16.mxu1 %v575_v0 }
  0x51   :  { %420 = vmatpush3.bf16.msra.mxu0 %v461_v7 }
  0x52   :  { %421 = vmatprep.subr.bf16.mxu0 %v575_v0  ;;  %440 = vmatpush3.bf16.msra.mxu1 %v470_v16 }
  0x53   :  { %441 = vmatprep.subr.bf16.mxu1 %v575_v0 }
  0x55   :  { %422 = vmatpush3.bf16.msra.mxu0 %v462_v8 }
  0x56   :  { %442 = vmatpush3.bf16.msra.mxu1 %v471_v17 }
  0x58   :  { %424 = vmatmul.mubr.bf16.vlgmr.msra.gmra.mrb[0].mxu0 %v463_v9 }
 0x12b   :  { %v182_v19 = vpop.f32.mrb[0].mxu0 }
 0x12c   :  { %v183_v20 = vadd.f32 %v361_v18, %v182_v19  ;;  %v425_v21 = vpop.f32.mrb[1].mxu0 }
 0x12d   :  { %v185_v22 = vpop.f32.mrb[2].mxu0 }
 0x12e   :  { %v189_v23 = vmul.f32 %v183_v20, %v183_v20  ;;  %v186_v24 = vadd.f32 %v361_v18, %v185_v22  ;;  %v426_v25 = vpop.f32.mrb[3].mxu0 }
 0x130   :  { %v191_v26 = vmul.f32 %v189_v23, %v183_v20  ;;  %v190_v27 = vmul.f32 %v186_v24, %v186_v24 }
 0x132   :  { %v193_v28 = vmul.f32 0.044715, %v191_v26  ;;  %v192_v29 = vmul.f32 %v190_v27, %v186_v24 }
 0x134   :  { %v195_v30 = vadd.f32 %v193_v28, %v183_v20  ;;  %v194_v31 = vmul.f32 0.044715, %v192_v29 }
 0x136   :  { %v197_v32 = vmul.f32 0.7978846, %v195_v30  ;;  %v196_v33 = vadd.f32 %v194_v31, %v186_v24 }
 0x138   :  { %472 = vtanh.f32 %v197_v32  ;;  %v198_v34 = vmul.f32 0.7978846, %v196_v33 }
 0x13a   :  { %474 = vtanh.f32 %v198_v34 }
 0x142   :  { %v473_v35 = vpop.eup %472 }
 0x143   :  { %v201_v36 = vadd.f32 1.0, %v473_v35 }
 0x144   :  { %v475_v37 = vpop.eup %474 }
 0x145   :  { %v202_v38 = vadd.f32 1.0, %v475_v37  ;;  %v203_v39 = vmul.f32 0.5, %v201_v36 }
 0x147   :  { %v204_v40 = vmul.f32 0.5, %v202_v38  ;;  %v205_v41 = vmul.f32 %v203_v39, %v183_v20 }
 0x149   :  { %v206_v42 = vmul.f32 %v204_v40, %v186_v24 }
 0x14b   :  { %v209_v43 = vpack.c.bf16 %v206_v42, %v205_v41 }
 0x14d   :  { %444 = vmatmul.mubr.bf16.vlgmr.msra.gmra.mrb[0].mxu1 %v209_v43 }
 0x220   :  { %v308_v44 = vpop.f32.mrb[0].mxu1 }
 0x221   :  { %v445_v46 = vpop.f32.mrb[1].mxu1  ;;  %v331_v48 = vadd.f32 %v379_v45, %v308_v44 }
 0x222   :  { %v311_v47 = vpop.f32.mrb[2].mxu1 }
 0x223   :  { %v332_v49 = vadd.f32 %v379_v45, %v311_v47  ;;  %v446_v50 = vpop.f32.mrb[3].mxu1 }
 0x225   :  { %v387_v51 = vpack.c.bf16 %v332_v49, %v331_v48 }
 0x227   :  { %388 = vst [vmem:[#allocation9] sm:$0xff] %v387_v51  }
 0x228   :  { %553 = shalt.err (!%p550_p0)
}
 0x229   :  { %s554_s4 = scalar_lea.hbm %s686_s5, 128 }
 0x22a   :  { %p555_p1 = scmp.ne.s32.totalorder %s686_s5, %s554_s4  ;;  %p558_p2 = scmp.lt.u32.totalorder %s554_s4, %s686_s5 }
 0x22c   :  { %p560_p3 = pnand %p558_p2, %p555_p1 }
 0x22e   :  { %563 = shalt.err (!%p560_p3)
}
 0x22f   :  { %354 = dma.vmem_to_hbm [thread:$0]  %s349_s9, 128, %s686_s5, [#allocation5], %s572_s30, %s572_s30, %s573_s6  }
 0x230   :  { %568 = dma.done.wait [#allocation5], 128  }
 0x231   :  { %569 = vsyncadd [#allocation5], 4294967168 }
 0x232   :  { %358 = vsyncpa [#allocation4], 1 }
 0x233   :  { %359 = vsyncpa [#allocation7], 1 }
 0x234   :  { %360 = vsyncpa [#allocation5], 1 }

</bundles_post_ra>
